<compile_context>
chip_gen: v5e
topology: v5e:2x2
jax: 0.10.0
libtpu: 0.0.40
codegen_flags: <defaults>
</compile_context>

<pallas_src>
import functools

import jax
import jax.numpy as jnp
from jax.experimental import pallas as pl
from jax.experimental.pallas import tpu as pltpu  # noqa: F401  (kept for TPU-specific use)

# ---- model dims (small, consistent with the module) ----
B = 2          # batch
T = 8          # seq_len
F = 4          # in_features
H = 32         # hidden_features
O = 8          # out_features
BB = 16        # backbone_features (backbone_depth = 1)
E = 2          # ensemble_size

# ---- lane-packed dims ----
H2 = E * H     # 64  : lane-packed hidden       [h_0 | h_1]
BB2 = E * BB   # 32  : lane-packed backbone     [bb_0 | bb_1]
Z = 4 * H2     # 256 : lane-packed fused output [ff1_0|ff1_1|ff2_0|ff2_1|ta_0|ta_1|tb_0|tb_1]

# ---- packed weight buffer layout: (N_ROWS, Z) f32, built once at init ----
ROW_WX = 0             # F   rows, lanes [0:BB2)  x->backbone, lane-concat per member
ROW_BBB = F            # 1   row,  lanes [0:BB2)  backbone bias (lane-concat)
ROW_BO = F + 1         # 1   row,  lanes [0:O)    ensemble-mean output bias
ROW_BF = F + 2         # 1   row,  lanes [0:Z)    fused [ff1|ff2|ta|tb] bias
ROW_WH = 8             # H2  rows, lanes [0:BB2)  block-diag h->backbone
ROW_WF = ROW_WH + H2   # BB2 rows, lanes [0:Z)    block-diag backbone->[ff1|ff2|ta|tb]
ROW_WO = ROW_WF + BB2  # H2  rows, lanes [0:O)    row-stacked, 1/E-scaled output weight
N_ROWS = ROW_WO + H2   # 168
assert ROW_BF < ROW_WH, "header rows must fit above ROW_WH"


def _lnn_ensemble_kernel(x_ref, ts_ref, w_ref, out_ref, *, batch):
    tb = x_ref.shape[0]            # T * B
    n_steps = tb // batch
    n_out = out_ref.shape[1]
    n_in = x_ref.shape[1]

    # Static slices of the packed weight buffer (zero-cost ref views; loads
    # happen at the slice).
    wx = w_ref[ROW_WX:ROW_WX + n_in, :BB2]     # (F, 2BB)
    bbb = w_ref[ROW_BBB:ROW_BBB + 1, :BB2]     # (1, 2BB)
    bo = w_ref[ROW_BO:ROW_BO + 1, :n_out]      # (1, O)   (ensemble mean folded in)
    bf = w_ref[ROW_BF:ROW_BF + 1, :]           # (1, 8H)
    wh = w_ref[ROW_WH:ROW_WH + H2, :BB2]       # (2H, 2BB) block-diagonal
    wf = w_ref[ROW_WF:ROW_WF + BB2, :]         # (2BB, 8H) block-diagonal (member-interleaved groups)
    wo = w_ref[ROW_WO:ROW_WO + H2, :n_out]     # (2H, O)   pre-scaled by 1/E

    x_flat = x_ref[...]                                       # (T*B, F)
    # Broadcast ts once (JAX does not CSE broadcasts in unrolled loops).
    ts_b = jnp.broadcast_to(ts_ref[...], (tb, H2))            # (T*B, 2H)

    # x-projection for ALL timesteps and BOTH members in one MXU op
    # (off the serial critical path).
    xproj = jnp.dot(x_flat, wx, preferred_element_type=jnp.float32) + bbb   # (T*B, 2BB)

    hcur = jnp.zeros((batch, H2), jnp.float32)                # [h_0 | h_1]
    h_steps = []
    for t in range(n_steps):
        r0 = t * batch
        # One lane-packed recurrence matmul for both members.
        bbt = jnp.tanh(
            xproj[r0:r0 + batch, :]
            + jnp.dot(hcur, wh, preferred_element_type=jnp.float32))        # (B, 2BB)
        # One fused lane-dense (B, 8H=256) projection for both members.
        z = jnp.dot(bbt, wf, preferred_element_type=jnp.float32) + bf       # (B, 8H)
        ff = jnp.tanh(z[:, :2 * H2])                                        # [ff1_0|ff1_1|ff2_0|ff2_1]
        ff1 = ff[:, :H2]
        ff2 = ff[:, H2:]
        t_i = jax.nn.sigmoid(
            z[:, 2 * H2:3 * H2] * ts_b[r0:r0 + batch, :] + z[:, 3 * H2:])   # [ti_0|ti_1]
        hcur = ff1 * (1.0 - t_i) + t_i * ff2                                # (B, 2H)
        h_steps.append(hcur)                                                # stays in vregs

    # Deferred output projection: one (T*B, 2H) @ (2H, O) matmul with the
    # ensemble mean folded into wo/bo, and a single output store.
    h_hist = jnp.concatenate(h_steps, axis=0)                 # (T*B, 2H), row order (t, b)
    out_ref[...] = jnp.dot(h_hist, wo, preferred_element_type=jnp.float32) + bo


def pack_params(params):
    """Build the single packed (N_ROWS, Z) f32 weight buffer.

    Called ONCE at parameter-init time (not per forward call).
    """
    (wbb, bbb, wf1, bf1, wf2, bf2, wta, bta, wtb, btb, wo, bo) = params
    assert wbb.shape[0] == E == 2, "packing assumes ensemble_size == 2"

    wx = wbb[:, :F, :]      # (E, F, BB)  rows acting on x_t
    wh = wbb[:, F:, :]      # (E, H, BB)  rows acting on h

    buf = jnp.zeros((N_ROWS, Z), jnp.float32)

    # x -> backbone (lane-concat over members) + bias.
    buf = buf.at[ROW_WX:ROW_WX + F, :BB2].set(
        jnp.concatenate([wx[0], wx[1]], axis=-1))
    buf = buf.at[ROW_BBB, :BB2].set(
        jnp.concatenate([bbb[0, 0], bbb[1, 0]], axis=-1))

    # Ensemble-mean output bias.
    buf = buf.at[ROW_BO, :O].set(jnp.mean(bo[:, 0, :], axis=0))

    # Block-diagonal h -> backbone.
    for e in range(E):
        buf = buf.at[ROW_WH + e * H:ROW_WH + (e + 1) * H,
                     e * BB:(e + 1) * BB].set(wh[e])

    # Block-diagonal fused backbone -> [ff1|ff2|ta|tb]; within each 2H group
    # the members are lane-interleaved (member 0 then member 1).
    group_ws = (wf1, wf2, wta, wtb)
    group_bs = (bf1, bf2, bta, btb)
    for g in range(4):
        for e in range(E):
            c0 = g * H2 + e * H
            buf = buf.at[ROW_WF + e * BB:ROW_WF + (e + 1) * BB,
                         c0:c0 + H].set(group_ws[g][e])
            buf = buf.at[ROW_BF, c0:c0 + H].set(group_bs[g][e, 0])

    # Row-stacked output weight with the ensemble mean folded in (scale 1/E).
    buf = buf.at[ROW_WO:ROW_WO + H2, :O].set(
        jnp.concatenate([wo[0], wo[1]], axis=0) / float(E))
    return buf


def lnn_ensemble_forward(x, ts, packed_w):
    """x: (B, T, F), ts: (B, T), packed_w: (N_ROWS, Z)  ->  (B, T, O)."""
    b, t, f = x.shape

    # Time-major flatten: row index = t * B + b.
    x_flat = jnp.transpose(x, (1, 0, 2)).reshape(t * b, f).astype(jnp.float32)
    ts_flat = jnp.transpose(ts, (1, 0)).reshape(t * b, 1).astype(jnp.float32)

    out_flat = pl.pallas_call(
        functools.partial(_lnn_ensemble_kernel, batch=b),
        out_shape=jax.ShapeDtypeStruct((t * b, O), jnp.float32),
    )(x_flat, ts_flat, packed_w)

    # rows are (t, b) -> (T, B, O) -> (B, T, O)
    return jnp.transpose(out_flat.reshape(t, b, O), (1, 0, 2))


def reference_forward(x, ts, params):
    """Pure-JAX reference with identical semantics (PyTorch layout)."""
    (wbb, bbb, wf1, bf1, wf2, bf2, wta, bta, wtb, btb, wo, bo) = params
    ensemble = wbb.shape[0]
    outs = []
    for e in range(ensemble):
        h = jnp.zeros((B, H), jnp.float32)
        ys = []
        for t in range(T):
            x_t = x[:, t, :]
            ts_t = ts[:, t][:, None]
            xh = jnp.concatenate([x_t, h], axis=-1)
            bb = jnp.tanh(xh @ wbb[e] + bbb[e])
            ff1 = jnp.tanh(bb @ wf1[e] + bf1[e])
            ff2 = jnp.tanh(bb @ wf2[e] + bf2[e])
            t_a = bb @ wta[e] + bta[e]
            t_b = bb @ wtb[e] + btb[e]
            ti = jax.nn.sigmoid(t_a * ts_t + t_b)
            h = ff1 * (1.0 - ti) + ti * ff2
            ys.append(h @ wo[e] + bo[e])
        outs.append(jnp.stack(ys, axis=1))
    return jnp.mean(jnp.stack(outs, axis=0), axis=0)


def init_params(key):
    ks = jax.random.split(key, 12)

    def w(k, shape, scale=0.2):
        return (scale * jax.random.normal(k, shape)).astype(jnp.float32)

    return (
        w(ks[0], (E, F + H, BB)), w(ks[1], (E, 1, BB)),
        w(ks[2], (E, BB, H)),     w(ks[3], (E, 1, H)),
        w(ks[4], (E, BB, H)),     w(ks[5], (E, 1, H)),
        w(ks[6], (E, BB, H)),     w(ks[7], (E, 1, H)),
        w(ks[8], (E, BB, H)),     w(ks[9], (E, 1, H)),
        w(ks[10], (E, H, O)),     w(ks[11], (E, 1, O)),
    )


if __name__ == "__main__":
    key = jax.random.PRNGKey(0)
    kx, kt, kp = jax.random.split(key, 3)

    x = jax.random.normal(kx, (B, T, F), dtype=jnp.float32)
    ts = jax.random.uniform(kt, (B, T), dtype=jnp.float32, minval=0.1, maxval=1.0)
    params = init_params(kp)

    # One-time weight packing (block-diagonal lane-packing of the E=2 members,
    # fused projections, ensemble mean folded into the output weight/bias).
    packed_w = jax.block_until_ready(pack_params(params))

    out = lnn_ensemble_forward(x, ts, packed_w)
    out = jax.block_until_ready(out)

    ref = reference_forward(x, ts, params)
    assert out.shape == (B, T, O)
    assert jnp.allclose(out, ref, atol=1e-3, rtol=1e-3), \
        f"max err {jnp.max(jnp.abs(out - ref))}"

    print("KERNEL_OK")
</pallas_src>

<mosaic_0001>
module attributes {stable_mosaic.version = 11 : i64} {
  func.func @_lnn_ensemble_kernel(%arg0: memref<16x4xf32, #tpu.memory_space<vmem>>, %arg1: memref<16x1xf32, #tpu.memory_space<vmem>>, %arg2: memref<168x256xf32, #tpu.memory_space<vmem>>, %arg3: memref<16x8xf32, #tpu.memory_space<vmem>>) attributes {dimension_semantics = [], scalar_prefetch = 0 : i64, scratch_operands = 0 : i64, tpu.core_type = #tpu.core_type<tc>} {
    %c0 = arith.constant 0 : index
    %c0_0 = arith.constant 0 : index
    %0 = vector.load %arg2[%c0, %c0_0] : memref<168x256xf32, #tpu.memory_space<vmem>>, vector<4x32xf32>
    %c4 = arith.constant 4 : index
    %c0_1 = arith.constant 0 : index
    %1 = vector.load %arg2[%c4, %c0_1] : memref<168x256xf32, #tpu.memory_space<vmem>>, vector<1x32xf32>
    %c5 = arith.constant 5 : index
    %c0_2 = arith.constant 0 : index
    %2 = vector.load %arg2[%c5, %c0_2] : memref<168x256xf32, #tpu.memory_space<vmem>>, vector<1x8xf32>
    %c6 = arith.constant 6 : index
    %c0_3 = arith.constant 0 : index
    %3 = vector.load %arg2[%c6, %c0_3] : memref<168x256xf32, #tpu.memory_space<vmem>>, vector<1x256xf32>
    %c8 = arith.constant 8 : index
    %c0_4 = arith.constant 0 : index
    %4 = vector.load %arg2[%c8, %c0_4] : memref<168x256xf32, #tpu.memory_space<vmem>>, vector<64x32xf32>
    %c72 = arith.constant 72 : index
    %c0_5 = arith.constant 0 : index
    %5 = vector.load %arg2[%c72, %c0_5] : memref<168x256xf32, #tpu.memory_space<vmem>>, vector<32x256xf32>
    %c104 = arith.constant 104 : index
    %c0_6 = arith.constant 0 : index
    %6 = vector.load %arg2[%c104, %c0_6] : memref<168x256xf32, #tpu.memory_space<vmem>>, vector<64x8xf32>
    %c0_7 = arith.constant 0 : index
    %c0_8 = arith.constant 0 : index
    %7 = vector.load %arg0[%c0_7, %c0_8] : memref<16x4xf32, #tpu.memory_space<vmem>>, vector<16x4xf32>
    %c0_9 = arith.constant 0 : index
    %c0_10 = arith.constant 0 : index
    %8 = vector.load %arg1[%c0_9, %c0_10] : memref<16x1xf32, #tpu.memory_space<vmem>>, vector<16x1xf32>
    %9 = vector.shape_cast %8 : vector<16x1xf32> to vector<16x1xf32>
    %10 = vector.broadcast %9 : vector<16x1xf32> to vector<16x64xf32>
    %cst = arith.constant dense<0.000000e+00> : vector<16x32xf32>
    %11 = tpu.matmul %7, %0, %cst {dimension_numbers = #tpu.dot_dimension_numbers<[1], [0], [0], [1], [0, 0, 1, 1], [], []>} : vector<16x4xf32>, vector<4x32xf32>, vector<16x32xf32> -> vector<16x32xf32>
    %12 = vector.broadcast %1 : vector<1x32xf32> to vector<16x32xf32>
    %13 = arith.addf %11, %12 : vector<16x32xf32>
    %cst_11 = arith.constant 0.000000e+00 : f32
    %14 = vector.broadcast %cst_11 : f32 to vector<2x64xf32>
    %15 = vector.extract_strided_slice %13 {offsets = [0, 0], sizes = [2, 32], strides = [1, 1]} : vector<16x32xf32> to vector<2x32xf32>
    %cst_12 = arith.constant dense<0.000000e+00> : vector<2x32xf32>
    %16 = tpu.matmul %14, %4, %cst_12 {dimension_numbers = #tpu.dot_dimension_numbers<[1], [0], [0], [1], [0, 0, 1, 1], [], []>} : vector<2x64xf32>, vector<64x32xf32>, vector<2x32xf32> -> vector<2x32xf32>
    %17 = arith.addf %15, %16 : vector<2x32xf32>
    %18 = math.tanh %17 : vector<2x32xf32>
    %cst_13 = arith.constant dense<0.000000e+00> : vector<2x256xf32>
    %19 = tpu.matmul %18, %5, %cst_13 {dimension_numbers = #tpu.dot_dimension_numbers<[1], [0], [0], [1], [0, 0, 1, 1], [], []>} : vector<2x32xf32>, vector<32x256xf32>, vector<2x256xf32> -> vector<2x256xf32>
    %20 = vector.broadcast %3 : vector<1x256xf32> to vector<2x256xf32>
    %21 = arith.addf %19, %20 : vector<2x256xf32>
    %22 = vector.extract_strided_slice %21 {offsets = [0, 0], sizes = [2, 128], strides = [1, 1]} : vector<2x256xf32> to vector<2x128xf32>
    %23 = math.tanh %22 : vector<2x128xf32>
    %24 = vector.extract_strided_slice %23 {offsets = [0, 0], sizes = [2, 64], strides = [1, 1]} : vector<2x128xf32> to vector<2x64xf32>
    %25 = vector.extract_strided_slice %23 {offsets = [0, 64], sizes = [2, 64], strides = [1, 1]} : vector<2x128xf32> to vector<2x64xf32>
    %26 = vector.extract_strided_slice %21 {offsets = [0, 128], sizes = [2, 64], strides = [1, 1]} : vector<2x256xf32> to vector<2x64xf32>
    %27 = vector.extract_strided_slice %10 {offsets = [0, 0], sizes = [2, 64], strides = [1, 1]} : vector<16x64xf32> to vector<2x64xf32>
    %28 = arith.mulf %26, %27 : vector<2x64xf32>
    %29 = vector.extract_strided_slice %21 {offsets = [0, 192], sizes = [2, 64], strides = [1, 1]} : vector<2x256xf32> to vector<2x64xf32>
    %30 = arith.addf %28, %29 : vector<2x64xf32>
    %31 = arith.negf %30 : vector<2x64xf32>
    %32 = math.exp %31 : vector<2x64xf32>
    %cst_14 = arith.constant 1.000000e+00 : f32
    %33 = vector.broadcast %cst_14 : f32 to vector<2x64xf32>
    %34 = arith.addf %33, %32 : vector<2x64xf32>
    %35 = arith.divf %33, %34 : vector<2x64xf32>
    %cst_15 = arith.constant 1.000000e+00 : f32
    %36 = vector.broadcast %cst_15 : f32 to vector<2x64xf32>
    %37 = arith.subf %36, %35 : vector<2x64xf32>
    %38 = arith.mulf %24, %37 : vector<2x64xf32>
    %39 = arith.mulf %35, %25 : vector<2x64xf32>
    %40 = arith.addf %38, %39 : vector<2x64xf32>
    %41 = vector.extract_strided_slice %13 {offsets = [2, 0], sizes = [2, 32], strides = [1, 1]} : vector<16x32xf32> to vector<2x32xf32>
    %cst_16 = arith.constant dense<0.000000e+00> : vector<2x32xf32>
    %42 = tpu.matmul %40, %4, %cst_16 {dimension_numbers = #tpu.dot_dimension_numbers<[1], [0], [0], [1], [0, 0, 1, 1], [], []>} : vector<2x64xf32>, vector<64x32xf32>, vector<2x32xf32> -> vector<2x32xf32>
    %43 = arith.addf %41, %42 : vector<2x32xf32>
    %44 = math.tanh %43 : vector<2x32xf32>
    %cst_17 = arith.constant dense<0.000000e+00> : vector<2x256xf32>
    %45 = tpu.matmul %44, %5, %cst_17 {dimension_numbers = #tpu.dot_dimension_numbers<[1], [0], [0], [1], [0, 0, 1, 1], [], []>} : vector<2x32xf32>, vector<32x256xf32>, vector<2x256xf32> -> vector<2x256xf32>
    %46 = vector.broadcast %3 : vector<1x256xf32> to vector<2x256xf32>
    %47 = arith.addf %45, %46 : vector<2x256xf32>
    %48 = vector.extract_strided_slice %47 {offsets = [0, 0], sizes = [2, 128], strides = [1, 1]} : vector<2x256xf32> to vector<2x128xf32>
    %49 = math.tanh %48 : vector<2x128xf32>
    %50 = vector.extract_strided_slice %49 {offsets = [0, 0], sizes = [2, 64], strides = [1, 1]} : vector<2x128xf32> to vector<2x64xf32>
    %51 = vector.extract_strided_slice %49 {offsets = [0, 64], sizes = [2, 64], strides = [1, 1]} : vector<2x128xf32> to vector<2x64xf32>
    %52 = vector.extract_strided_slice %47 {offsets = [0, 128], sizes = [2, 64], strides = [1, 1]} : vector<2x256xf32> to vector<2x64xf32>
    %53 = vector.extract_strided_slice %10 {offsets = [2, 0], sizes = [2, 64], strides = [1, 1]} : vector<16x64xf32> to vector<2x64xf32>
    %54 = arith.mulf %52, %53 : vector<2x64xf32>
    %55 = vector.extract_strided_slice %47 {offsets = [0, 192], sizes = [2, 64], strides = [1, 1]} : vector<2x256xf32> to vector<2x64xf32>
    %56 = arith.addf %54, %55 : vector<2x64xf32>
    %57 = arith.negf %56 : vector<2x64xf32>
    %58 = math.exp %57 : vector<2x64xf32>
    %cst_18 = arith.constant 1.000000e+00 : f32
    %59 = vector.broadcast %cst_18 : f32 to vector<2x64xf32>
    %60 = arith.addf %59, %58 : vector<2x64xf32>
    %61 = arith.divf %59, %60 : vector<2x64xf32>
    %cst_19 = arith.constant 1.000000e+00 : f32
    %62 = vector.broadcast %cst_19 : f32 to vector<2x64xf32>
    %63 = arith.subf %62, %61 : vector<2x64xf32>
    %64 = arith.mulf %50, %63 : vector<2x64xf32>
    %65 = arith.mulf %61, %51 : vector<2x64xf32>
    %66 = arith.addf %64, %65 : vector<2x64xf32>
    %67 = vector.extract_strided_slice %13 {offsets = [4, 0], sizes = [2, 32], strides = [1, 1]} : vector<16x32xf32> to vector<2x32xf32>
    %cst_20 = arith.constant dense<0.000000e+00> : vector<2x32xf32>
    %68 = tpu.matmul %66, %4, %cst_20 {dimension_numbers = #tpu.dot_dimension_numbers<[1], [0], [0], [1], [0, 0, 1, 1], [], []>} : vector<2x64xf32>, vector<64x32xf32>, vector<2x32xf32> -> vector<2x32xf32>
    %69 = arith.addf %67, %68 : vector<2x32xf32>
    %70 = math.tanh %69 : vector<2x32xf32>
    %cst_21 = arith.constant dense<0.000000e+00> : vector<2x256xf32>
    %71 = tpu.matmul %70, %5, %cst_21 {dimension_numbers = #tpu.dot_dimension_numbers<[1], [0], [0], [1], [0, 0, 1, 1], [], []>} : vector<2x32xf32>, vector<32x256xf32>, vector<2x256xf32> -> vector<2x256xf32>
    %72 = vector.broadcast %3 : vector<1x256xf32> to vector<2x256xf32>
    %73 = arith.addf %71, %72 : vector<2x256xf32>
    %74 = vector.extract_strided_slice %73 {offsets = [0, 0], sizes = [2, 128], strides = [1, 1]} : vector<2x256xf32> to vector<2x128xf32>
    %75 = math.tanh %74 : vector<2x128xf32>
    %76 = vector.extract_strided_slice %75 {offsets = [0, 0], sizes = [2, 64], strides = [1, 1]} : vector<2x128xf32> to vector<2x64xf32>
    %77 = vector.extract_strided_slice %75 {offsets = [0, 64], sizes = [2, 64], strides = [1, 1]} : vector<2x128xf32> to vector<2x64xf32>
    %78 = vector.extract_strided_slice %73 {offsets = [0, 128], sizes = [2, 64], strides = [1, 1]} : vector<2x256xf32> to vector<2x64xf32>
    %79 = vector.extract_strided_slice %10 {offsets = [4, 0], sizes = [2, 64], strides = [1, 1]} : vector<16x64xf32> to vector<2x64xf32>
    %80 = arith.mulf %78, %79 : vector<2x64xf32>
    %81 = vector.extract_strided_slice %73 {offsets = [0, 192], sizes = [2, 64], strides = [1, 1]} : vector<2x256xf32> to vector<2x64xf32>
    %82 = arith.addf %80, %81 : vector<2x64xf32>
    %83 = arith.negf %82 : vector<2x64xf32>
    %84 = math.exp %83 : vector<2x64xf32>
    %cst_22 = arith.constant 1.000000e+00 : f32
    %85 = vector.broadcast %cst_22 : f32 to vector<2x64xf32>
    %86 = arith.addf %85, %84 : vector<2x64xf32>
    %87 = arith.divf %85, %86 : vector<2x64xf32>
    %cst_23 = arith.constant 1.000000e+00 : f32
    %88 = vector.broadcast %cst_23 : f32 to vector<2x64xf32>
    %89 = arith.subf %88, %87 : vector<2x64xf32>
    %90 = arith.mulf %76, %89 : vector<2x64xf32>
    %91 = arith.mulf %87, %77 : vector<2x64xf32>
    %92 = arith.addf %90, %91 : vector<2x64xf32>
    %93 = vector.extract_strided_slice %13 {offsets = [6, 0], sizes = [2, 32], strides = [1, 1]} : vector<16x32xf32> to vector<2x32xf32>
    %cst_24 = arith.constant dense<0.000000e+00> : vector<2x32xf32>
    %94 = tpu.matmul %92, %4, %cst_24 {dimension_numbers = #tpu.dot_dimension_numbers<[1], [0], [0], [1], [0, 0, 1, 1], [], []>} : vector<2x64xf32>, vector<64x32xf32>, vector<2x32xf32> -> vector<2x32xf32>
    %95 = arith.addf %93, %94 : vector<2x32xf32>
    %96 = math.tanh %95 : vector<2x32xf32>
    %cst_25 = arith.constant dense<0.000000e+00> : vector<2x256xf32>
    %97 = tpu.matmul %96, %5, %cst_25 {dimension_numbers = #tpu.dot_dimension_numbers<[1], [0], [0], [1], [0, 0, 1, 1], [], []>} : vector<2x32xf32>, vector<32x256xf32>, vector<2x256xf32> -> vector<2x256xf32>
    %98 = vector.broadcast %3 : vector<1x256xf32> to vector<2x256xf32>
    %99 = arith.addf %97, %98 : vector<2x256xf32>
    %100 = vector.extract_strided_slice %99 {offsets = [0, 0], sizes = [2, 128], strides = [1, 1]} : vector<2x256xf32> to vector<2x128xf32>
    %101 = math.tanh %100 : vector<2x128xf32>
    %102 = vector.extract_strided_slice %101 {offsets = [0, 0], sizes = [2, 64], strides = [1, 1]} : vector<2x128xf32> to vector<2x64xf32>
    %103 = vector.extract_strided_slice %101 {offsets = [0, 64], sizes = [2, 64], strides = [1, 1]} : vector<2x128xf32> to vector<2x64xf32>
    %104 = vector.extract_strided_slice %99 {offsets = [0, 128], sizes = [2, 64], strides = [1, 1]} : vector<2x256xf32> to vector<2x64xf32>
    %105 = vector.extract_strided_slice %10 {offsets = [6, 0], sizes = [2, 64], strides = [1, 1]} : vector<16x64xf32> to vector<2x64xf32>
    %106 = arith.mulf %104, %105 : vector<2x64xf32>
    %107 = vector.extract_strided_slice %99 {offsets = [0, 192], sizes = [2, 64], strides = [1, 1]} : vector<2x256xf32> to vector<2x64xf32>
    %108 = arith.addf %106, %107 : vector<2x64xf32>
    %109 = arith.negf %108 : vector<2x64xf32>
    %110 = math.exp %109 : vector<2x64xf32>
    %cst_26 = arith.constant 1.000000e+00 : f32
    %111 = vector.broadcast %cst_26 : f32 to vector<2x64xf32>
    %112 = arith.addf %111, %110 : vector<2x64xf32>
    %113 = arith.divf %111, %112 : vector<2x64xf32>
    %cst_27 = arith.constant 1.000000e+00 : f32
    %114 = vector.broadcast %cst_27 : f32 to vector<2x64xf32>
    %115 = arith.subf %114, %113 : vector<2x64xf32>
    %116 = arith.mulf %102, %115 : vector<2x64xf32>
    %117 = arith.mulf %113, %103 : vector<2x64xf32>
    %118 = arith.addf %116, %117 : vector<2x64xf32>
    %119 = vector.extract_strided_slice %13 {offsets = [8, 0], sizes = [2, 32], strides = [1, 1]} : vector<16x32xf32> to vector<2x32xf32>
    %cst_28 = arith.constant dense<0.000000e+00> : vector<2x32xf32>
    %120 = tpu.matmul %118, %4, %cst_28 {dimension_numbers = #tpu.dot_dimension_numbers<[1], [0], [0], [1], [0, 0, 1, 1], [], []>} : vector<2x64xf32>, vector<64x32xf32>, vector<2x32xf32> -> vector<2x32xf32>
    %121 = arith.addf %119, %120 : vector<2x32xf32>
    %122 = math.tanh %121 : vector<2x32xf32>
    %cst_29 = arith.constant dense<0.000000e+00> : vector<2x256xf32>
    %123 = tpu.matmul %122, %5, %cst_29 {dimension_numbers = #tpu.dot_dimension_numbers<[1], [0], [0], [1], [0, 0, 1, 1], [], []>} : vector<2x32xf32>, vector<32x256xf32>, vector<2x256xf32> -> vector<2x256xf32>
    %124 = vector.broadcast %3 : vector<1x256xf32> to vector<2x256xf32>
    %125 = arith.addf %123, %124 : vector<2x256xf32>
    %126 = vector.extract_strided_slice %125 {offsets = [0, 0], sizes = [2, 128], strides = [1, 1]} : vector<2x256xf32> to vector<2x128xf32>
    %127 = math.tanh %126 : vector<2x128xf32>
    %128 = vector.extract_strided_slice %127 {offsets = [0, 0], sizes = [2, 64], strides = [1, 1]} : vector<2x128xf32> to vector<2x64xf32>
    %129 = vector.extract_strided_slice %127 {offsets = [0, 64], sizes = [2, 64], strides = [1, 1]} : vector<2x128xf32> to vector<2x64xf32>
    %130 = vector.extract_strided_slice %125 {offsets = [0, 128], sizes = [2, 64], strides = [1, 1]} : vector<2x256xf32> to vector<2x64xf32>
    %131 = vector.extract_strided_slice %10 {offsets = [8, 0], sizes = [2, 64], strides = [1, 1]} : vector<16x64xf32> to vector<2x64xf32>
    %132 = arith.mulf %130, %131 : vector<2x64xf32>
    %133 = vector.extract_strided_slice %125 {offsets = [0, 192], sizes = [2, 64], strides = [1, 1]} : vector<2x256xf32> to vector<2x64xf32>
    %134 = arith.addf %132, %133 : vector<2x64xf32>
    %135 = arith.negf %134 : vector<2x64xf32>
    %136 = math.exp %135 : vector<2x64xf32>
    %cst_30 = arith.constant 1.000000e+00 : f32
    %137 = vector.broadcast %cst_30 : f32 to vector<2x64xf32>
    %138 = arith.addf %137, %136 : vector<2x64xf32>
    %139 = arith.divf %137, %138 : vector<2x64xf32>
    %cst_31 = arith.constant 1.000000e+00 : f32
    %140 = vector.broadcast %cst_31 : f32 to vector<2x64xf32>
    %141 = arith.subf %140, %139 : vector<2x64xf32>
    %142 = arith.mulf %128, %141 : vector<2x64xf32>
    %143 = arith.mulf %139, %129 : vector<2x64xf32>
    %144 = arith.addf %142, %143 : vector<2x64xf32>
    %145 = vector.extract_strided_slice %13 {offsets = [10, 0], sizes = [2, 32], strides = [1, 1]} : vector<16x32xf32> to vector<2x32xf32>
    %cst_32 = arith.constant dense<0.000000e+00> : vector<2x32xf32>
    %146 = tpu.matmul %144, %4, %cst_32 {dimension_numbers = #tpu.dot_dimension_numbers<[1], [0], [0], [1], [0, 0, 1, 1], [], []>} : vector<2x64xf32>, vector<64x32xf32>, vector<2x32xf32> -> vector<2x32xf32>
    %147 = arith.addf %145, %146 : vector<2x32xf32>
    %148 = math.tanh %147 : vector<2x32xf32>
    %cst_33 = arith.constant dense<0.000000e+00> : vector<2x256xf32>
    %149 = tpu.matmul %148, %5, %cst_33 {dimension_numbers = #tpu.dot_dimension_numbers<[1], [0], [0], [1], [0, 0, 1, 1], [], []>} : vector<2x32xf32>, vector<32x256xf32>, vector<2x256xf32> -> vector<2x256xf32>
    %150 = vector.broadcast %3 : vector<1x256xf32> to vector<2x256xf32>
    %151 = arith.addf %149, %150 : vector<2x256xf32>
    %152 = vector.extract_strided_slice %151 {offsets = [0, 0], sizes = [2, 128], strides = [1, 1]} : vector<2x256xf32> to vector<2x128xf32>
    %153 = math.tanh %152 : vector<2x128xf32>
    %154 = vector.extract_strided_slice %153 {offsets = [0, 0], sizes = [2, 64], strides = [1, 1]} : vector<2x128xf32> to vector<2x64xf32>
    %155 = vector.extract_strided_slice %153 {offsets = [0, 64], sizes = [2, 64], strides = [1, 1]} : vector<2x128xf32> to vector<2x64xf32>
    %156 = vector.extract_strided_slice %151 {offsets = [0, 128], sizes = [2, 64], strides = [1, 1]} : vector<2x256xf32> to vector<2x64xf32>
    %157 = vector.extract_strided_slice %10 {offsets = [10, 0], sizes = [2, 64], strides = [1, 1]} : vector<16x64xf32> to vector<2x64xf32>
    %158 = arith.mulf %156, %157 : vector<2x64xf32>
    %159 = vector.extract_strided_slice %151 {offsets = [0, 192], sizes = [2, 64], strides = [1, 1]} : vector<2x256xf32> to vector<2x64xf32>
    %160 = arith.addf %158, %159 : vector<2x64xf32>
    %161 = arith.negf %160 : vector<2x64xf32>
    %162 = math.exp %161 : vector<2x64xf32>
    %cst_34 = arith.constant 1.000000e+00 : f32
    %163 = vector.broadcast %cst_34 : f32 to vector<2x64xf32>
    %164 = arith.addf %163, %162 : vector<2x64xf32>
    %165 = arith.divf %163, %164 : vector<2x64xf32>
    %cst_35 = arith.constant 1.000000e+00 : f32
    %166 = vector.broadcast %cst_35 : f32 to vector<2x64xf32>
    %167 = arith.subf %166, %165 : vector<2x64xf32>
    %168 = arith.mulf %154, %167 : vector<2x64xf32>
    %169 = arith.mulf %165, %155 : vector<2x64xf32>
    %170 = arith.addf %168, %169 : vector<2x64xf32>
    %171 = vector.extract_strided_slice %13 {offsets = [12, 0], sizes = [2, 32], strides = [1, 1]} : vector<16x32xf32> to vector<2x32xf32>
    %cst_36 = arith.constant dense<0.000000e+00> : vector<2x32xf32>
    %172 = tpu.matmul %170, %4, %cst_36 {dimension_numbers = #tpu.dot_dimension_numbers<[1], [0], [0], [1], [0, 0, 1, 1], [], []>} : vector<2x64xf32>, vector<64x32xf32>, vector<2x32xf32> -> vector<2x32xf32>
    %173 = arith.addf %171, %172 : vector<2x32xf32>
    %174 = math.tanh %173 : vector<2x32xf32>
    %cst_37 = arith.constant dense<0.000000e+00> : vector<2x256xf32>
    %175 = tpu.matmul %174, %5, %cst_37 {dimension_numbers = #tpu.dot_dimension_numbers<[1], [0], [0], [1], [0, 0, 1, 1], [], []>} : vector<2x32xf32>, vector<32x256xf32>, vector<2x256xf32> -> vector<2x256xf32>
    %176 = vector.broadcast %3 : vector<1x256xf32> to vector<2x256xf32>
    %177 = arith.addf %175, %176 : vector<2x256xf32>
    %178 = vector.extract_strided_slice %177 {offsets = [0, 0], sizes = [2, 128], strides = [1, 1]} : vector<2x256xf32> to vector<2x128xf32>
    %179 = math.tanh %178 : vector<2x128xf32>
    %180 = vector.extract_strided_slice %179 {offsets = [0, 0], sizes = [2, 64], strides = [1, 1]} : vector<2x128xf32> to vector<2x64xf32>
    %181 = vector.extract_strided_slice %179 {offsets = [0, 64], sizes = [2, 64], strides = [1, 1]} : vector<2x128xf32> to vector<2x64xf32>
    %182 = vector.extract_strided_slice %177 {offsets = [0, 128], sizes = [2, 64], strides = [1, 1]} : vector<2x256xf32> to vector<2x64xf32>
    %183 = vector.extract_strided_slice %10 {offsets = [12, 0], sizes = [2, 64], strides = [1, 1]} : vector<16x64xf32> to vector<2x64xf32>
    %184 = arith.mulf %182, %183 : vector<2x64xf32>
    %185 = vector.extract_strided_slice %177 {offsets = [0, 192], sizes = [2, 64], strides = [1, 1]} : vector<2x256xf32> to vector<2x64xf32>
    %186 = arith.addf %184, %185 : vector<2x64xf32>
    %187 = arith.negf %186 : vector<2x64xf32>
    %188 = math.exp %187 : vector<2x64xf32>
    %cst_38 = arith.constant 1.000000e+00 : f32
    %189 = vector.broadcast %cst_38 : f32 to vector<2x64xf32>
    %190 = arith.addf %189, %188 : vector<2x64xf32>
    %191 = arith.divf %189, %190 : vector<2x64xf32>
    %cst_39 = arith.constant 1.000000e+00 : f32
    %192 = vector.broadcast %cst_39 : f32 to vector<2x64xf32>
    %193 = arith.subf %192, %191 : vector<2x64xf32>
    %194 = arith.mulf %180, %193 : vector<2x64xf32>
    %195 = arith.mulf %191, %181 : vector<2x64xf32>
    %196 = arith.addf %194, %195 : vector<2x64xf32>
    %197 = vector.extract_strided_slice %13 {offsets = [14, 0], sizes = [2, 32], strides = [1, 1]} : vector<16x32xf32> to vector<2x32xf32>
    %cst_40 = arith.constant dense<0.000000e+00> : vector<2x32xf32>
    %198 = tpu.matmul %196, %4, %cst_40 {dimension_numbers = #tpu.dot_dimension_numbers<[1], [0], [0], [1], [0, 0, 1, 1], [], []>} : vector<2x64xf32>, vector<64x32xf32>, vector<2x32xf32> -> vector<2x32xf32>
    %199 = arith.addf %197, %198 : vector<2x32xf32>
    %200 = math.tanh %199 : vector<2x32xf32>
    %cst_41 = arith.constant dense<0.000000e+00> : vector<2x256xf32>
    %201 = tpu.matmul %200, %5, %cst_41 {dimension_numbers = #tpu.dot_dimension_numbers<[1], [0], [0], [1], [0, 0, 1, 1], [], []>} : vector<2x32xf32>, vector<32x256xf32>, vector<2x256xf32> -> vector<2x256xf32>
    %202 = vector.broadcast %3 : vector<1x256xf32> to vector<2x256xf32>
    %203 = arith.addf %201, %202 : vector<2x256xf32>
    %204 = vector.extract_strided_slice %203 {offsets = [0, 0], sizes = [2, 128], strides = [1, 1]} : vector<2x256xf32> to vector<2x128xf32>
    %205 = math.tanh %204 : vector<2x128xf32>
    %206 = vector.extract_strided_slice %205 {offsets = [0, 0], sizes = [2, 64], strides = [1, 1]} : vector<2x128xf32> to vector<2x64xf32>
    %207 = vector.extract_strided_slice %205 {offsets = [0, 64], sizes = [2, 64], strides = [1, 1]} : vector<2x128xf32> to vector<2x64xf32>
    %208 = vector.extract_strided_slice %203 {offsets = [0, 128], sizes = [2, 64], strides = [1, 1]} : vector<2x256xf32> to vector<2x64xf32>
    %209 = vector.extract_strided_slice %10 {offsets = [14, 0], sizes = [2, 64], strides = [1, 1]} : vector<16x64xf32> to vector<2x64xf32>
    %210 = arith.mulf %208, %209 : vector<2x64xf32>
    %211 = vector.extract_strided_slice %203 {offsets = [0, 192], sizes = [2, 64], strides = [1, 1]} : vector<2x256xf32> to vector<2x64xf32>
    %212 = arith.addf %210, %211 : vector<2x64xf32>
    %213 = arith.negf %212 : vector<2x64xf32>
    %214 = math.exp %213 : vector<2x64xf32>
    %cst_42 = arith.constant 1.000000e+00 : f32
    %215 = vector.broadcast %cst_42 : f32 to vector<2x64xf32>
    %216 = arith.addf %215, %214 : vector<2x64xf32>
    %217 = arith.divf %215, %216 : vector<2x64xf32>
    %cst_43 = arith.constant 1.000000e+00 : f32
    %218 = vector.broadcast %cst_43 : f32 to vector<2x64xf32>
    %219 = arith.subf %218, %217 : vector<2x64xf32>
    %220 = arith.mulf %206, %219 : vector<2x64xf32>
    %221 = arith.mulf %217, %207 : vector<2x64xf32>
    %222 = arith.addf %220, %221 : vector<2x64xf32>
    %223 = tpu.concatenate %40, %66, %92, %118, %144, %170, %196, %222 in 0 : vector<2x64xf32>, vector<2x64xf32>, vector<2x64xf32>, vector<2x64xf32>, vector<2x64xf32>, vector<2x64xf32>, vector<2x64xf32>, vector<2x64xf32> -> vector<16x64xf32>
    %cst_44 = arith.constant dense<0.000000e+00> : vector<16x8xf32>
    %224 = tpu.matmul %223, %6, %cst_44 {dimension_numbers = #tpu.dot_dimension_numbers<[1], [0], [0], [1], [0, 0, 1, 1], [], []>} : vector<16x64xf32>, vector<64x8xf32>, vector<16x8xf32> -> vector<16x8xf32>
    %225 = vector.broadcast %2 : vector<1x8xf32> to vector<16x8xf32>
    %226 = arith.addf %224, %225 : vector<16x8xf32>
    %c0_45 = arith.constant 0 : index
    %c0_46 = arith.constant 0 : index
    %227 = vector.load %arg3[%c0_45, %c0_46] : memref<16x8xf32, #tpu.memory_space<vmem>>, vector<16x8xf32>
    tpu.vector_store %arg3[%c0_45, %c0_46], %226 {strides = array<i32>} : memref<16x8xf32, #tpu.memory_space<vmem>>, vector<16x8xf32>,
    return
  }
}

</mosaic_0001>

<bundles_post_ra>
// kernel: tpu_custom_call.1
= control target key start
LH: loop header
LB: loop body
LE: loop exit
PB: predicated region body
PF: predicated region fallthrough
CT: control target
= control target key end

     0   :  { %8 = vsyncpa [#allocation3], 0  ;;  %s1157_s15 = smov [#allocation2]   ;;  %s1158_s17 = smov 256   ;;  %s1489_s0 = inlined_call_operand.vmem [shape: f32[16,4], index: 0, kind: input, shape index: {}]   ;;  %s1490_s1 = inlined_call_operand.vmem [shape: f32[16,1], index: 1, kind: input, shape index: {}]   ;;  %s1491_s2 = inlined_call_operand.hbm [shape: f32[168,256], index: 2, kind: input, shape index: {}]   ;;  %s1492_s3 = inlined_call_operand.vmem [shape: f32[16,8], index: 3, kind: output, shape index: {}]  }
   0x1   :  { %s17_s14 = sshll.u32 %s1491_s2, 4  ;;  %s19_s16 = sshll.u32 %s1157_s15, 4  ;;  %s18_s14 = int_to_ptr.hbm [resolvable:$true] %s17_s14  ;;  %s20_s16 = int_to_ptr.vmem [resolvable:$true] %s19_s16 }
   0x2   :  { %s1159_s18 = smov 16  }
   0x3   :  { %25 = dma.hbm_to_vmem [thread:$0]  %s18_s14, 5376, %s20_s16, [#allocation3], %s1158_s17, %s1158_s17, %s1159_s18  }
   0x4   :  { %1155 = dma.done.wait [#allocation3], 5376  }
   0x5   :  { %1156 = vsyncadd [#allocation3], 4294961920  ;;  %v1186_v0 = vld [vmem:[#allocation2 + $0x80] sm:$0xff]  ;;  %v1188_v1 = vld [vmem:[#allocation2 + $0x70] sm:$0xff]  ;;  %vm70_vm0 = vcmask 1043456   ;;  %vm63_vm1 = vcmask 31744  }
   0x6   :  { %109 = vmatpush.msra.mxu2 %v1186_v0  ;;  %330 = vmatpush.msra.mxu1 %v1186_v0  ;;  %v1192_v2 = vld [vmem:[#allocation2 + $0x60] sm:$0xff]  ;;  %v1199_v5 = vld [vmem:[#allocation2 + $0x50] sm:$0xff]  ;;  %v1160_v10 = vmov 0.0   ;;  %v1263_v15 = vld [vmem:[#allocation2 + $0xc8] sm:$0xff]  ;;  %v1161_v20 = vmov 0   ;;  %vm128_vm2 = vcmask 261120  }
   0x7   :  { %v30_v3 = vld [vmem:[#allocation2] sm:$0xf]  ;;  %v1210_v7 = vld [vmem:[#allocation2 + $0x30] sm:$0xff]  ;;  %v1265_v16 = vld [vmem:[#allocation2 + $0xb8] sm:$0xff]  ;;  %1066 = vset.pattern.permute.xlu0 %v1161_v20  ;;  %s1162_s22 = smov 64   ;;  %vm97_vm7 = vcmask 523264  }
   0x8   :  { %110 = vmatpush.msra.mxu2 %v1188_v1  ;;  %1024 = vmatpush.msk.msra.mxu0 %vm70_vm0, %v30_v3  ;;  %v59_v4 = vld [vmem:[%s1489_s0] sm:$0xff]  ;;  %v1220_v9 = vld [vmem:[#allocation2 + $0x10] sm:$0xff]  ;;  %v1269_v17 = vld [vmem:[#allocation2 + $0xa8] sm:$0xff] }
   0x9   :  { %1025 = vmatmul.msk.f32.vlgmr.msra.gmra.mxu0 %vm63_vm1, %v59_v4  ;;  %331 = vmatpush.msra.mxu1 %v1188_v1  ;;  %v1205_v6 = vld [vmem:[#allocation2 + $0x40] sm:$0xff]  ;;  %v1250_v12 = vld [vmem:[#allocation2 + $0xb0] sm:$0xff]  ;;  %v1273_v18 = vld [vmem:[#allocation2 + $0x98] sm:$0xff] }
   0xa   :  { %111 = vmatpush.msra.mxu2 %v1192_v2  ;;  %222 = vmatpush.msrb.mxu0 %v1186_v0  ;;  %v1215_v8 = vld [vmem:[#allocation2 + $0x20] sm:$0xff]  ;;  %v1257_v14 = vld [vmem:[#allocation2 + $0x90] sm:$0xff]  ;;  %v60_v36 = vld [vmem:[%s1489_s0 + $0x8] sm:$0xff] }
   0xb   :  { %332 = vmatpush.msra.mxu1 %v1192_v2  ;;  %v1247_v11 = vld [vmem:[#allocation2 + $0xc0] sm:$0xff] }
   0xc   :  { %112 = vmatpush.msra.mxu2 %v1199_v5  ;;  %223 = vmatpush.msrb.mxu0 %v1188_v1  ;;  %v1253_v13 = vld [vmem:[#allocation2 + $0xa0] sm:$0xff] }
   0xd   :  { %333 = vmatpush.msra.mxu1 %v1199_v5  ;;  %144 = vmatpush.msra.mxu3 %v1247_v11  ;;  %v61_v19 = vld [vmem:[%s1490_s1] sm:$0xff] }
   0xe   :  { %113 = vmatpush.msra.mxu2 %v1205_v6  ;;  %224 = vmatpush.msrb.mxu0 %v1192_v2  ;;  %v1282_v21 = vld [vmem:[#allocation2 + $0x4] ss:$0 sm:$0xff]  ;;  %v34_v27 = vld [vmem:[#allocation2 + $0x6] ss:$8 sm:$0x3] }
   0xf   :  { %334 = vmatpush.msra.mxu1 %v1205_v6  ;;  %145 = vmatpush.msra.mxu3 %v1250_v12  ;;  %v1298_v28 = vperm.slane %v34_v27, 0  ;;  %v1301_v31 = vperm.slane %v34_v27, 1 }
  0x10   :  { %114 = vmatpush.msra.mxu2 %v1210_v7  ;;  %225 = vmatpush.msrb.mxu0 %v1199_v5 }
  0x11   :  { %335 = vmatpush.msra.mxu1 %v1210_v7  ;;  %146 = vmatpush.msra.mxu3 %v1253_v13 }
  0x12   :  { %115 = vmatpush.msra.mxu2 %v1215_v8  ;;  %226 = vmatpush.msrb.mxu0 %v1205_v6 }
  0x13   :  { %336 = vmatpush.msra.mxu1 %v1215_v8  ;;  %147 = vmatpush.msra.mxu3 %v1257_v14 }
  0x14   :  { %116 = vmatpush.msra.mxu2 %v1220_v9  ;;  %227 = vmatpush.msrb.mxu0 %v1210_v7 }
  0x15   :  { %117 = vmatmul.f32.vlgmr.msra.gmra.mxu2 %v1160_v10  ;;  %337 = vmatpush.msra.mxu1 %v1220_v9 }
  0x16   :  { %228 = vmatpush.msrb.mxu0 %v1215_v8  ;;  %255 = vmatpush.msrb.mxu2 %v1247_v11 }
  0x17   :  { %546 = vmatpush.msrb.mxu1 %v1186_v0  ;;  %164 = vmatpush.msrb.mxu3 %v1263_v15 }
  0x18   :  { %229 = vmatpush.msrb.mxu0 %v1220_v9  ;;  %256 = vmatpush.msrb.mxu2 %v1250_v12 }
  0x19   :  { %547 = vmatpush.msrb.mxu1 %v1188_v1  ;;  %165 = vmatpush.msrb.mxu3 %v1265_v16 }
  0x1a   :  { %438 = vmatpush.msra.mxu0 %v1186_v0  ;;  %257 = vmatpush.msrb.mxu2 %v1253_v13 }
  0x1b   :  { %548 = vmatpush.msrb.mxu1 %v1192_v2  ;;  %166 = vmatpush.msrb.mxu3 %v1269_v17 }
  0x1c   :  { %439 = vmatpush.msra.mxu0 %v1188_v1  ;;  %258 = vmatpush.msrb.mxu2 %v1257_v14 }
  0x1d   :  { %549 = vmatpush.msrb.mxu1 %v1199_v5  ;;  %167 = vmatpush.msrb.mxu3 %v1273_v18 }
  0x1e   :  { %440 = vmatpush.msra.mxu0 %v1192_v2  ;;  %363 = vmatpush.msra.mxu2 %v1247_v11 }
  0x1f   :  { %550 = vmatpush.msrb.mxu1 %v1205_v6  ;;  %175 = vperm.xlu0 %1066, %v61_v19  }
  0x20   :  { %441 = vmatpush.msra.mxu0 %v1199_v5  ;;  %364 = vmatpush.msra.mxu2 %v1250_v12 }
  0x21   :  { %551 = vmatpush.msrb.mxu1 %v1210_v7  ;;  %1026 = vmatmul.msk.f32.gmra.mxu0 %vm63_vm1, %v60_v36  ;;  %vm979_vm1 = vcmask 1041408  }
  0x22   :  { %442 = vmatpush.msra.mxu0 %v1205_v6  ;;  %365 = vmatpush.msra.mxu2 %v1253_v13 }
  0x23   :  { %552 = vmatpush.msrb.mxu1 %v1215_v8 }
  0x24   :  { %443 = vmatpush.msra.mxu0 %v1210_v7  ;;  %366 = vmatpush.msra.mxu2 %v1257_v14 }
  0x25   :  { %553 = vmatpush.msrb.mxu1 %v1220_v9 }
  0x26   :  { %444 = vmatpush.msra.mxu0 %v1215_v8 }
  0x28   :  { %445 = vmatpush.msra.mxu0 %v1220_v9 }
  0x86   :  { %v91_v22 = vpop.f32.mrf.mxu0 }
  0x87   :  { %v1285_v23 = vadd.f32 %v91_v22, %v1282_v21 }
  0x91   :  { %v1306_v35 = vpop.permute.xlu0 %175 }
  0x92   :  { %v284_v22 = vrot.slane %v1306_v35, 2 }
  0x98   :  { %v118_v24 = vpop.f32.mrf.mxu2 }
  0x99   :  { %v121_v25 = vadd.f32 %v118_v24, %v1285_v23 }
  0x9b   :  { %1067 = vtanh.f32 %v121_v25 }
  0x9e   :  { %v1325_v58 = vpop.f32.mrf.mxu0 }
  0xa1   :  { %v1068_v26 = vpop.eup %1067 }
  0xa2   :  { %1027 = vmatmul.msk.f32.vlgmr.msra.gmra.mxu3 %vm128_vm2, %v1068_v26 }
  0xa3   :  { %275 = vmatpush.msra.mxu3 %v1263_v15 }
  0xa5   :  { %276 = vmatpush.msra.mxu3 %v1265_v16 }
  0xa7   :  { %277 = vmatpush.msra.mxu3 %v1269_v17 }
  0xa9   :  { %278 = vmatpush.msra.mxu3 %v1273_v18 }
  0xaa   :  { %1028 = vmatmul.msk.f32.vlgmr.msrb.gmra.mxu3 %vm128_vm2, %v1068_v26 }
  0xab   :  { %383 = vmatpush.msrb.mxu3 %v1263_v15 }
  0xad   :  { %384 = vmatpush.msrb.mxu3 %v1265_v16 }
  0xaf   :  { %385 = vmatpush.msrb.mxu3 %v1269_v17 }
  0xb1   :  { %386 = vmatpush.msrb.mxu3 %v1273_v18 }
 0x125   :  { %v149_v29 = vpop.f32.mrf.mxu3 }
 0x126   :  { %v150_v30 = vadd.f32 %v149_v29, %v1298_v28 }
 0x128   :  { %1069 = vtanh.f32 %v150_v30 }
 0x12d   :  { %v169_v32 = vpop.f32.mrf.mxu3 }
 0x12e   :  { %v1070_v33 = vpop.eup %1069  ;;  %v170_v34 = vadd.f32 %v169_v32, %v1301_v31 }
 0x12f   :  { %206 = vrot.lane.b32.xlu1 %v1070_v33, %s1162_s22 }
 0x130   :  { %180 = vrot.lane.b32.xlu0 %v170_v34, %s1162_s22  ;;  %v178_v37 = vmul.f32 %v1306_v35, %v170_v34 }
 0x1a1   :  { %v207_v54 = vpop.permute.xlu1 %206 }
 0x1a2   :  { %v181_v38 = vpop.permute.xlu0 %180 }
 0x1a3   :  { %v183_v39 = vadd.f32 %v181_v38, %v178_v37 }
 0x1a5   :  { %v1029_v40 = vmul.f32 -1.442695, %v183_v39 }
 0x1a7   :  { %1071 = vpow2.f32 %v1029_v40 }
 0x1ad   :  { %v1072_v41 = vpop.eup %1071 }
 0x1ae   :  { %v187_v42 = vadd.f32 1.0, %v1072_v41 }
 0x1b0   :  { %1073 = vrcp.f32 %v187_v42  ;;  %v199_v46 = vand.u32 2147483648, %v187_v42  ;;  %v197_v48 = vand.u32 2147483647, %v187_v42  ;;  %vm193_vm4 = vweird.f32 %v187_v42 }
 0x1b2   :  { %v200_v50 = vor.u32 1.1754944e-38, %v199_v46  ;;  %vm198_vm6 = vcmp.eq.f32.partialorder %v197_v48, 8.507059e+37 }
 0x1b6   :  { %v1074_v43 = vpop.eup %1073 }
 0x1b7   :  { %v189_v44 = vmul.f32 %v1074_v43, %v187_v42  ;;  %vm194_vm3 = vweird.f32 %v1074_v43 }
 0x1b8   :  { %vm195_vm5 = vmor %vm193_vm4, %vm194_vm3 }
 0x1b9   :  { %v190_v45 = vsub.f32 1.0, %v189_v44 }
 0x1bb   :  { %v191_v47 = vmul.f32 %v1074_v43, %v190_v45 }
 0x1bd   :  { %v192_v49 = vadd.f32 %v1074_v43, %v191_v47 }
 0x1bf   :  { %v196_v51 = vsel %vm195_vm5, %v1074_v43, %v192_v49 }
 0x1c0   :  { %v201_v52 = vsel %vm198_vm6, %v200_v50, %v196_v51 }
 0x1c1   :  { %v203_v53 = vsub.f32 1.0, %v201_v52  ;;  %v209_v56 = vmul.f32 %v207_v54, %v201_v52 }
 0x1c3   :  { %v204_v55 = vmul.f32 %v1070_v33, %v203_v53 }
 0x1c5   :  { %v1313_v57 = vadd.f32 %v209_v56, %v204_v55 }
 0x1c7   :  { %1030 = vmatmul.msk.f32.vlgmr.msrb.gmra.mxu0 %vm97_vm7, %v1313_v57 }
 0x1c8   :  { %653 = vmatpush.msrb.mxu0 %v1186_v0 }
 0x1ca   :  { %654 = vmatpush.msrb.mxu0 %v1188_v1 }
 0x1cc   :  { %655 = vmatpush.msrb.mxu0 %v1192_v2 }
 0x1ce   :  { %656 = vmatpush.msrb.mxu0 %v1199_v5 }
 0x1d0   :  { %657 = vmatpush.msrb.mxu0 %v1205_v6 }
 0x1d2   :  { %658 = vmatpush.msrb.mxu0 %v1210_v7 }
 0x1d4   :  { %659 = vmatpush.msrb.mxu0 %v1215_v8 }
 0x1d6   :  { %660 = vmatpush.msrb.mxu0 %v1220_v9 }
 0x244   :  { %v231_v59 = vpop.f32.mrf.mxu0 }
 0x245   :  { %v235_v60 = vrot.slane %v231_v59, 6 }
 0x247   :  { %v237_v61 = vadd.f32 %v235_v60, %v1285_v23  ;;  %v62_v60 = vld [vmem:[%s1490_s1 + $0x8] sm:$0xff] }
 0x249   :  { %1075 = vtanh.f32 %v237_v61  ;;  %v392_v61 = vrot.slane %v1306_v35, 4 }
 0x24f   :  { %v1076_v62 = vpop.eup %1075 }
 0x250   :  { %v240_v63 = vrot.slane %v1076_v62, 2 }
 0x252   :  { %1031 = vmatmul.msk.f32.vlgmr.msrb.gmra.mxu2 %vm128_vm2, %v240_v63  ;;  %1032 = vmatmul.msk.f32.vlgmr.msra.gmra.mxu3 %vm128_vm2, %v240_v63 }
 0x253   :  { %491 = vmatpush.msra.mxu3 %v1263_v15  ;;  %471 = vmatpush.msrb.mxu2 %v1247_v11 }
 0x255   :  { %492 = vmatpush.msra.mxu3 %v1265_v16  ;;  %472 = vmatpush.msrb.mxu2 %v1250_v12 }
 0x257   :  { %493 = vmatpush.msra.mxu3 %v1269_v17  ;;  %473 = vmatpush.msrb.mxu2 %v1253_v13 }
 0x259   :  { %494 = vmatpush.msra.mxu3 %v1273_v18  ;;  %474 = vmatpush.msrb.mxu2 %v1257_v14 }
 0x2d5   :  { %v260_v3 = vpop.f32.mrf.mxu2  ;;  %v280_v4 = vpop.f32.mrf.mxu3 }
 0x2d6   :  { %v261_v10 = vadd.f32 %v260_v3, %v1298_v28  ;;  %v281_v19 = vadd.f32 %v280_v4, %v1301_v31 }
 0x2d8   :  { %1077 = vtanh.f32 %v261_v10  ;;  %288 = vrot.lane.b32.xlu1 %v281_v19, %s1162_s22  ;;  %v286_v24 = vmul.f32 %v284_v22, %v281_v19 }
 0x2de   :  { %v1078_v20 = vpop.eup %1077 }
 0x2df   :  { %314 = vrot.lane.b32.xlu2 %v1078_v20, %s1162_s22 }
 0x339   :  { %v315_v44 = vpop.permute.xlu2 %314 }
 0x34a   :  { %v289_v25 = vpop.permute.xlu1 %288 }
 0x34b   :  { %v291_v26 = vadd.f32 %v289_v25, %v286_v24 }
 0x34d   :  { %v1033_v27 = vmul.f32 -1.442695, %v291_v26 }
 0x34f   :  { %1079 = vpow2.f32 %v1033_v27 }
 0x355   :  { %v1080_v29 = vpop.eup %1079 }
 0x356   :  { %v295_v30 = vadd.f32 1.0, %v1080_v29 }
 0x358   :  { %1081 = vrcp.f32 %v295_v30  ;;  %v307_v36 = vand.u32 2147483648, %v295_v30  ;;  %v305_v38 = vand.u32 2147483647, %v295_v30  ;;  %vm301_vm9 = vweird.f32 %v295_v30 }
 0x35a   :  { %v308_v40 = vor.u32 1.1754944e-38, %v307_v36  ;;  %vm306_vm11 = vcmp.eq.f32.partialorder %v305_v38, 8.507059e+37 }
 0x35e   :  { %v1082_v32 = vpop.eup %1081 }
 0x35f   :  { %v297_v33 = vmul.f32 %v1082_v32, %v295_v30  ;;  %vm302_vm8 = vweird.f32 %v1082_v32 }
 0x360   :  { %vm303_vm10 = vmor %vm301_vm9, %vm302_vm8  ;;  %vm982_vm8 = vcmask 1045504  }
 0x361   :  { %v298_v34 = vsub.f32 1.0, %v297_v33 }
 0x363   :  { %v299_v37 = vmul.f32 %v1082_v32, %v298_v34 }
 0x365   :  { %v300_v39 = vadd.f32 %v1082_v32, %v299_v37 }
 0x367   :  { %v304_v41 = vsel %vm303_vm10, %v1082_v32, %v300_v39 }
 0x368   :  { %v309_v42 = vsel %vm306_vm11, %v308_v40, %v304_v41 }
 0x369   :  { %v311_v43 = vsub.f32 1.0, %v309_v42  ;;  %v317_v46 = vmul.f32 %v315_v44, %v309_v42 }
 0x36b   :  { %v312_v45 = vmul.f32 %v1078_v20, %v311_v43 }
 0x36d   :  { %v1343_v47 = vadd.f32 %v317_v46, %v312_v45 }
 0x36f   :  { %1034 = vmatmul.msk.f32.vlgmr.msra.gmra.mxu1 %vm97_vm7, %v1343_v47  ;;  %v966_v39 = vrot.slane %v1343_v47, 6 }
 0x370   :  { %761 = vmatpush.msra.mxu1 %v1186_v0 }
 0x371   :  { %v980_v42 = vsel %vm979_vm1, %v1313_v57, %v966_v39 }
 0x372   :  { %762 = vmatpush.msra.mxu1 %v1188_v1 }
 0x374   :  { %763 = vmatpush.msra.mxu1 %v1192_v2 }
 0x376   :  { %764 = vmatpush.msra.mxu1 %v1199_v5 }
 0x378   :  { %765 = vmatpush.msra.mxu1 %v1205_v6 }
 0x37a   :  { %766 = vmatpush.msra.mxu1 %v1210_v7 }
 0x37c   :  { %767 = vmatpush.msra.mxu1 %v1215_v8 }
 0x37e   :  { %768 = vmatpush.msra.mxu1 %v1220_v9 }
 0x3ec   :  { %v339_v48 = vpop.f32.mrf.mxu1 }
 0x3ed   :  { %v343_v49 = vrot.slane %v339_v48, 4 }
 0x3ef   :  { %v345_v50 = vadd.f32 %v343_v49, %v1285_v23 }
 0x3f1   :  { %1083 = vtanh.f32 %v345_v50 }
 0x3f7   :  { %v1084_v51 = vpop.eup %1083 }
 0x3f8   :  { %v348_v52 = vrot.slane %v1084_v51, 4 }
 0x3fa   :  { %1035 = vmatmul.msk.f32.vlgmr.msra.gmra.mxu2 %vm128_vm2, %v348_v52  ;;  %1036 = vmatmul.msk.f32.vlgmr.msrb.gmra.mxu3 %vm128_vm2, %v348_v52 }
 0x3fb   :  { %595 = vmatpush.msrb.mxu3 %v1263_v15  ;;  %575 = vmatpush.msra.mxu2 %v1247_v11 }
 0x3fd   :  { %596 = vmatpush.msrb.mxu3 %v1265_v16  ;;  %576 = vmatpush.msra.mxu2 %v1250_v12 }
 0x3ff   :  { %597 = vmatpush.msrb.mxu3 %v1269_v17  ;;  %577 = vmatpush.msra.mxu2 %v1253_v13 }
 0x401   :  { %598 = vmatpush.msrb.mxu3 %v1273_v18  ;;  %578 = vmatpush.msra.mxu2 %v1257_v14 }
 0x47d   :  { %v368_v53 = vpop.f32.mrf.mxu2  ;;  %v388_v54 = vpop.f32.mrf.mxu3 }
 0x47e   :  { %v369_v55 = vadd.f32 %v368_v53, %v1298_v28  ;;  %v389_v56 = vadd.f32 %v388_v54, %v1301_v31 }
 0x480   :  { %1085 = vtanh.f32 %v369_v55  ;;  %396 = vrot.lane.b32.xlu2 %v389_v56, %s1162_s22  ;;  %v394_v62 = vmul.f32 %v392_v61, %v389_v56 }
 0x486   :  { %v1086_v59 = vpop.eup %1085 }
 0x487   :  { %422 = vrot.lane.b32.xlu0 %v1086_v59, %s1162_s22 }
 0x48f   :  { %606 = vperm.xlu0 %1066, %v62_v60  }
 0x4da   :  { %v397_v63 = vpop.permute.xlu2 %396 }
 0x4db   :  { %v399_v3 = vadd.f32 %v397_v63, %v394_v62 }
 0x4dd   :  { %v1037_v4 = vmul.f32 -1.442695, %v399_v3 }
 0x4df   :  { %1087 = vpow2.f32 %v1037_v4 }
 0x4e5   :  { %v1088_v10 = vpop.eup %1087 }
 0x4e6   :  { %v403_v19 = vadd.f32 1.0, %v1088_v10 }
 0x4e8   :  { %1089 = vrcp.f32 %v403_v19  ;;  %v415_v25 = vand.u32 2147483648, %v403_v19  ;;  %v413_v27 = vand.u32 2147483647, %v403_v19  ;;  %vm409_vm13 = vweird.f32 %v403_v19 }
 0x4ea   :  { %v416_v30 = vor.u32 1.1754944e-38, %v415_v25  ;;  %vm414_vm15 = vcmp.eq.f32.partialorder %v413_v27, 8.507059e+37 }
 0x4ee   :  { %v1090_v20 = vpop.eup %1089 }
 0x4ef   :  { %v405_v22 = vmul.f32 %v1090_v20, %v403_v19  ;;  %vm410_vm12 = vweird.f32 %v1090_v20 }
 0x4f0   :  { %vm411_vm14 = vmor %vm409_vm13, %vm410_vm12 }
 0x4f1   :  { %v406_v24 = vsub.f32 1.0, %v405_v22  ;;  %v1412_v22 = vadd.f32 %v1325_v58, %v1282_v21 }
 0x4f3   :  { %v407_v26 = vmul.f32 %v1090_v20, %v406_v24 }
 0x4f5   :  { %v408_v29 = vadd.f32 %v1090_v20, %v407_v26 }
 0x4f7   :  { %v412_v32 = vsel %vm411_vm14, %v1090_v20, %v408_v29 }
 0x4f8   :  { %v417_v33 = vsel %vm414_vm15, %v416_v30, %v412_v32 }
 0x4f9   :  { %v419_v34 = vsub.f32 1.0, %v417_v33  ;;  %v423_v36 = vpop.permute.xlu0 %422 }
 0x4fa   :  { %v425_v37 = vmul.f32 %v423_v36, %v417_v33 }
 0x4fb   :  { %v420_v38 = vmul.f32 %v1086_v59, %v419_v34 }
 0x4fd   :  { %v426_v40 = vadd.f32 %v425_v37, %v420_v38 }
 0x4ff   :  { %v968_v41 = vrot.slane %v426_v40, 4  ;;  %1038 = vmatmul.msk.f32.vlgmr.msra.gmra.mxu0 %vm97_vm7, %v426_v40 }
 0x500   :  { %869 = vmatpush.msra.mxu0 %v1186_v0 }
 0x501   :  { %v1380_v43 = vsel %vm70_vm0, %v980_v42, %v968_v41  ;;  %v1429_v32 = vpop.permute.xlu0 %606 }
 0x502   :  { %870 = vmatpush.msra.mxu0 %v1188_v1 }
 0x504   :  { %871 = vmatpush.msra.mxu0 %v1192_v2 }
 0x506   :  { %872 = vmatpush.msra.mxu0 %v1199_v5 }
 0x508   :  { %873 = vmatpush.msra.mxu0 %v1205_v6 }
 0x50a   :  { %874 = vmatpush.msra.mxu0 %v1210_v7 }
 0x50c   :  { %875 = vmatpush.msra.mxu0 %v1215_v8  ;;  %v500_v8 = vrot.slane %v1306_v35, 6 }
 0x50e   :  { %876 = vmatpush.msra.mxu0 %v1220_v9 }
 0x57c   :  { %v447_v57 = vpop.f32.mrf.mxu0 }
 0x57d   :  { %v451_v44 = vrot.slane %v447_v57, 2 }
 0x57f   :  { %v453_v0 = vadd.f32 %v451_v44, %v1285_v23 }
 0x581   :  { %1091 = vtanh.f32 %v453_v0 }
 0x587   :  { %v1092_v45 = vpop.eup %1091 }
 0x588   :  { %v456_v46 = vrot.slane %v1092_v45, 6 }
 0x58a   :  { %1039 = vmatmul.msk.f32.vlgmr.msrb.gmra.mxu2 %vm128_vm2, %v456_v46  ;;  %1040 = vmatmul.msk.f32.vlgmr.msra.gmra.mxu3 %vm128_vm2, %v456_v46 }
 0x58b   :  { %706 = vmatpush.msra.mxu3 %v1263_v15  ;;  %686 = vmatpush.msrb.mxu2 %v1247_v11 }
 0x58d   :  { %707 = vmatpush.msra.mxu3 %v1265_v16  ;;  %687 = vmatpush.msrb.mxu2 %v1250_v12 }
 0x58f   :  { %708 = vmatpush.msra.mxu3 %v1269_v17  ;;  %688 = vmatpush.msrb.mxu2 %v1253_v13 }
 0x591   :  { %709 = vmatpush.msra.mxu3 %v1273_v18  ;;  %689 = vmatpush.msrb.mxu2 %v1257_v14 }
 0x60d   :  { %v476_v1 = vpop.f32.mrf.mxu2  ;;  %v496_v2 = vpop.f32.mrf.mxu3 }
 0x60e   :  { %v477_v5 = vadd.f32 %v476_v1, %v1298_v28  ;;  %v497_v6 = vadd.f32 %v496_v2, %v1301_v31 }
 0x610   :  { %1093 = vtanh.f32 %v477_v5  ;;  %504 = vrot.lane.b32.xlu1 %v497_v6, %s1162_s22  ;;  %v502_v9 = vmul.f32 %v500_v8, %v497_v6 }
 0x616   :  { %v1094_v7 = vpop.eup %1093 }
 0x617   :  { %530 = vrot.lane.b32.xlu2 %v1094_v7, %s1162_s22 }
 0x671   :  { %v531_v63 = vpop.permute.xlu2 %530 }
 0x682   :  { %v505_v23 = vpop.permute.xlu1 %504 }
 0x683   :  { %v507_v47 = vadd.f32 %v505_v23, %v502_v9 }
 0x685   :  { %v1041_v48 = vmul.f32 -1.442695, %v507_v47 }
 0x687   :  { %1095 = vpow2.f32 %v1041_v48 }
 0x68d   :  { %v1096_v49 = vpop.eup %1095 }
 0x68e   :  { %v511_v50 = vadd.f32 1.0, %v1096_v49 }
 0x690   :  { %1097 = vrcp.f32 %v511_v50  ;;  %v523_v54 = vand.u32 2147483648, %v511_v50  ;;  %v521_v56 = vand.u32 2147483647, %v511_v50  ;;  %vm517_vm4 = vweird.f32 %v511_v50 }
 0x692   :  { %v524_v60 = vor.u32 1.1754944e-38, %v523_v54  ;;  %vm522_vm6 = vcmp.eq.f32.partialorder %v521_v56, 8.507059e+37  ;;  %v54_v56 = vld [vmem:[#allocation2 + $0x100] sm:$0xff] }
 0x696   :  { %v1098_v51 = vpop.eup %1097 }
 0x697   :  { %v513_v52 = vmul.f32 %v1098_v51, %v511_v50  ;;  %vm518_vm3 = vweird.f32 %v1098_v51 }
 0x698   :  { %vm519_vm5 = vmor %vm517_vm4, %vm518_vm3  ;;  %vm1016_vm4 = vcmask 64512  }
 0x699   :  { %v514_v53 = vsub.f32 1.0, %v513_v52 }
 0x69b   :  { %v515_v55 = vmul.f32 %v1098_v51, %v514_v53  ;;  %v56_v53 = vld [vmem:[#allocation2 + $0x120] sm:$0xff] }
 0x69d   :  { %v516_v59 = vadd.f32 %v1098_v51, %v515_v55  ;;  %v55_v55 = vld [vmem:[#allocation2 + $0x110] sm:$0xff] }
 0x69f   :  { %v520_v35 = vsel %vm519_vm5, %v1098_v51, %v516_v59  ;;  %v53_v59 = vld [vmem:[#allocation2 + $0xf0] sm:$0xff] }
 0x6a0   :  { %v525_v61 = vsel %vm522_vm6, %v524_v60, %v520_v35  ;;  %v52_v60 = vld [vmem:[#allocation2 + $0xe0] sm:$0xff]  ;;  %v51_v35 = vld [vmem:[#allocation2 + $0xd0] sm:$0xff] }
 0x6a1   :  { %v527_v62 = vsub.f32 1.0, %v525_v61  ;;  %v533_v4 = vmul.f32 %v531_v63, %v525_v61 }
 0x6a3   :  { %v528_v3 = vmul.f32 %v1094_v7, %v527_v62 }
 0x6a5   :  { %v534_v10 = vadd.f32 %v533_v4, %v528_v3 }
 0x6a7   :  { %1042 = vmatmul.msk.f32.vlgmr.msrb.gmra.mxu1 %vm97_vm7, %v534_v10  ;;  %v970_v19 = vrot.slane %v534_v10, 2 }
 0x6a9   :  { %v1408_v20 = vsel %vm982_vm8, %v1380_v43, %v970_v19 }
 0x724   :  { %v555_v24 = vpop.f32.mrf.mxu1 }
 0x725   :  { %v558_v25 = vadd.f32 %v555_v24, %v1412_v22 }
 0x727   :  { %1099 = vtanh.f32 %v558_v25 }
 0x72d   :  { %v1100_v26 = vpop.eup %1099 }
 0x72e   :  { %1043 = vmatmul.msk.f32.vlgmr.msra.gmra.mxu2 %vm128_vm2, %v1100_v26  ;;  %1044 = vmatmul.msk.f32.vlgmr.msrb.gmra.mxu3 %vm128_vm2, %v1100_v26 }
 0x72f   :  { %814 = vmatpush.msrb.mxu3 %v1263_v15  ;;  %794 = vmatpush.msra.mxu2 %v1247_v11 }
 0x731   :  { %815 = vmatpush.msrb.mxu3 %v1265_v16  ;;  %795 = vmatpush.msra.mxu2 %v1250_v12 }
 0x733   :  { %816 = vmatpush.msrb.mxu3 %v1269_v17  ;;  %796 = vmatpush.msra.mxu2 %v1253_v13 }
 0x735   :  { %817 = vmatpush.msrb.mxu3 %v1273_v18  ;;  %797 = vmatpush.msra.mxu2 %v1257_v14 }
 0x7b1   :  { %v580_v21 = vpop.f32.mrf.mxu2  ;;  %v600_v58 = vpop.f32.mrf.mxu3 }
 0x7b2   :  { %v581_v27 = vadd.f32 %v580_v21, %v1298_v28  ;;  %v601_v29 = vadd.f32 %v600_v58, %v1301_v31 }
 0x7b4   :  { %1101 = vtanh.f32 %v581_v27  ;;  %611 = vrot.lane.b32.xlu1 %v601_v29, %s1162_s22  ;;  %v609_v33 = vmul.f32 %v1429_v32, %v601_v29 }
 0x7ba   :  { %v1102_v30 = vpop.eup %1101 }
 0x7bb   :  { %637 = vrot.lane.b32.xlu2 %v1102_v30, %s1162_s22 }
 0x815   :  { %v638_v5 = vpop.permute.xlu2 %637 }
 0x826   :  { %v612_v34 = vpop.permute.xlu1 %611 }
 0x827   :  { %v614_v36 = vadd.f32 %v612_v34, %v609_v33 }
 0x829   :  { %v1045_v37 = vmul.f32 -1.442695, %v614_v36 }
 0x82b   :  { %1103 = vpow2.f32 %v1045_v37 }
 0x831   :  { %v1104_v38 = vpop.eup %1103 }
 0x832   :  { %v618_v39 = vadd.f32 1.0, %v1104_v38 }
 0x834   :  { %1105 = vrcp.f32 %v618_v39  ;;  %v630_v43 = vand.u32 2147483648, %v618_v39  ;;  %v628_v44 = vand.u32 2147483647, %v618_v39  ;;  %vm624_vm10 = vweird.f32 %v618_v39 }
 0x836   :  { %v631_v45 = vor.u32 1.1754944e-38, %v630_v43  ;;  %vm629_vm12 = vcmp.eq.f32.partialorder %v628_v44, 8.507059e+37 }
 0x83a   :  { %v1106_v40 = vpop.eup %1105 }
 0x83b   :  { %v620_v41 = vmul.f32 %v1106_v40, %v618_v39  ;;  %vm625_vm9 = vweird.f32 %v1106_v40  ;;  %v1456_v39 = vld [vmem:[#allocation2 + $0x5] ss:$0 sm:$0xff] }
 0x83c   :  { %vm626_vm11 = vmor %vm624_vm10, %vm625_vm9 }
 0x83d   :  { %v621_v42 = vsub.f32 1.0, %v620_v41 }
 0x83f   :  { %v622_v57 = vmul.f32 %v1106_v40, %v621_v42 }
 0x841   :  { %v623_v0 = vadd.f32 %v1106_v40, %v622_v57 }
 0x843   :  { %v627_v46 = vsel %vm626_vm11, %v1106_v40, %v623_v0 }
 0x844   :  { %v632_v1 = vsel %vm629_vm12, %v631_v45, %v627_v46  ;;  %v823_v46 = vrot.slane %v1429_v32, 4 }
 0x845   :  { %v634_v2 = vsub.f32 1.0, %v632_v1  ;;  %v640_v7 = vmul.f32 %v638_v5, %v632_v1 }
 0x847   :  { %v635_v6 = vmul.f32 %v1102_v30, %v634_v2 }
 0x849   :  { %v1432_v8 = vadd.f32 %v640_v7, %v635_v6 }
 0x84b   :  { %1046 = vmatmul.msk.f32.vlgmr.msrb.gmra.mxu0 %vm97_vm7, %v1432_v8 }
 0x8c8   :  { %v662_v9 = vpop.f32.mrf.mxu0 }
 0x8c9   :  { %v666_v23 = vrot.slane %v662_v9, 6 }
 0x8cb   :  { %v668_v47 = vadd.f32 %v666_v23, %v1412_v22 }
 0x8cd   :  { %1107 = vtanh.f32 %v668_v47 }
 0x8d3   :  { %v1108_v48 = vpop.eup %1107 }
 0x8d4   :  { %v671_v49 = vrot.slane %v1108_v48, 2 }
 0x8d6   :  { %1047 = vmatmul.msk.f32.vlgmr.msrb.gmra.mxu2 %vm128_vm2, %v671_v49  ;;  %1048 = vmatmul.msk.f32.vlgmr.msra.gmra.mxu3 %vm128_vm2, %v671_v49 }
 0x8d7   :  { %922 = vmatpush.msra.mxu3 %v1263_v15  ;;  %902 = vmatpush.msrb.mxu2 %v1247_v11 }
 0x8d9   :  { %923 = vmatpush.msra.mxu3 %v1265_v16  ;;  %903 = vmatpush.msrb.mxu2 %v1250_v12  ;;  %v715_v12 = vrot.slane %v1429_v32, 2  ;;  %v58_v16 = vld [vmem:[#allocation2 + $0x140] sm:$0xff] }
 0x8da   :  { %1001 = vmatpush.msrb.mxu1 %v58_v16 }
 0x8db   :  { %924 = vmatpush.msra.mxu3 %v1269_v17  ;;  %904 = vmatpush.msrb.mxu2 %v1253_v13  ;;  %v57_v17 = vld [vmem:[#allocation2 + $0x130] sm:$0xff] }
 0x8dc   :  { %1002 = vmatpush.msrb.mxu1 %v57_v17 }
 0x8dd   :  { %925 = vmatpush.msra.mxu3 %v1273_v18  ;;  %905 = vmatpush.msrb.mxu2 %v1257_v14 }
 0x8de   :  { %1003 = vmatpush.msrb.mxu1 %v56_v53 }
 0x8e0   :  { %1004 = vmatpush.msrb.mxu1 %v55_v55 }
 0x8e2   :  { %1005 = vmatpush.msrb.mxu1 %v54_v56 }
 0x8e4   :  { %1006 = vmatpush.msrb.mxu1 %v53_v59 }
 0x8e6   :  { %1007 = vmatpush.msrb.mxu1 %v52_v60 }
 0x8e8   :  { %1008 = vmatpush.msrb.mxu1 %v51_v35 }
 0x959   :  { %v691_v50 = vpop.f32.mrf.mxu2  ;;  %v711_v51 = vpop.f32.mrf.mxu3 }
 0x95a   :  { %v692_v52 = vadd.f32 %v691_v50, %v1298_v28  ;;  %v712_v15 = vadd.f32 %v711_v51, %v1301_v31 }
 0x95c   :  { %1109 = vtanh.f32 %v692_v52  ;;  %719 = vrot.lane.b32.xlu0 %v712_v15, %s1162_s22  ;;  %v717_v13 = vmul.f32 %v715_v12, %v712_v15 }
 0x962   :  { %v1110_v11 = vpop.eup %1109 }
 0x963   :  { %745 = vrot.lane.b32.xlu1 %v1110_v11, %s1162_s22 }
 0x9ce   :  { %v720_v18 = vpop.permute.xlu0 %719 }
 0x9cf   :  { %v722_v14 = vadd.f32 %v720_v18, %v717_v13 }
 0x9d1   :  { %v1049_v54 = vmul.f32 -1.442695, %v722_v14 }
 0x9d3   :  { %1111 = vpow2.f32 %v1049_v54 }
 0x9d5   :  { %v746_v29 = vpop.permute.xlu1 %745 }
 0x9d9   :  { %v1112_v61 = vpop.eup %1111 }
 0x9da   :  { %v726_v62 = vadd.f32 1.0, %v1112_v61 }
 0x9dc   :  { %1113 = vrcp.f32 %v726_v62  ;;  %v738_v10 = vand.u32 2147483648, %v726_v62  ;;  %v736_v24 = vand.u32 2147483647, %v726_v62  ;;  %vm732_vm14 = vweird.f32 %v726_v62 }
 0x9de   :  { %v739_v26 = vor.u32 1.1754944e-38, %v738_v10  ;;  %vm737_vm3 = vcmp.eq.f32.partialorder %v736_v24, 8.507059e+37 }
 0x9e2   :  { %v1114_v63 = vpop.eup %1113 }
 0x9e3   :  { %v728_v3 = vmul.f32 %v1114_v63, %v726_v62  ;;  %vm733_vm13 = vweird.f32 %v1114_v63 }
 0x9e4   :  { %vm734_vm15 = vmor %vm732_vm14, %vm733_vm13 }
 0x9e5   :  { %v729_v4 = vsub.f32 1.0, %v728_v3 }
 0x9e7   :  { %v730_v19 = vmul.f32 %v1114_v63, %v729_v4 }
 0x9e9   :  { %v731_v25 = vadd.f32 %v1114_v63, %v730_v19 }
 0x9eb   :  { %v735_v21 = vsel %vm734_vm15, %v1114_v63, %v731_v25 }
 0x9ec   :  { %v740_v58 = vsel %vm737_vm3, %v739_v26, %v735_v21 }
 0x9ed   :  { %v742_v27 = vsub.f32 1.0, %v740_v58  ;;  %v748_v33 = vmul.f32 %v746_v29, %v740_v58 }
 0x9ef   :  { %v743_v30 = vmul.f32 %v1110_v11, %v742_v27 }
 0x9f1   :  { %v749_v34 = vadd.f32 %v748_v33, %v743_v30 }
 0x9f3   :  { %1050 = vmatmul.msk.f32.vlgmr.msra.gmra.mxu1 %vm97_vm7, %v749_v34  ;;  %v972_v14 = vrot.slane %v749_v34, 6 }
 0x9f5   :  { %v984_v55 = vsel %vm979_vm1, %v1432_v8, %v972_v14 }
 0x9fb   :  { %1058 = vmatmul.msk.f32.vlgmr.msrb.gmra.mxu1 %vm97_vm7, %v1408_v20 }
 0xa70   :  { %v770_v36 = vpop.f32.mrf.mxu1 }
 0xa71   :  { %v774_v37 = vrot.slane %v770_v36, 4 }
 0xa73   :  { %v776_v38 = vadd.f32 %v774_v37, %v1412_v22 }
 0xa75   :  { %1115 = vtanh.f32 %v776_v38 }
 0xa78   :  { %v1010_v40 = vpop.f32.mrf.mxu1 }
 0xa79   :  { %v1011_v41 = vadd.f32 %v1010_v40, %v1456_v39 }
 0xa7b   :  { %v1116_v42 = vpop.eup %1115  ;;  %1017 = vst.msk [vmem:[%s1492_s3] sm:$0xff] %vm1016_vm4, %v1011_v41 }
 0xa7c   :  { %v779_v43 = vrot.slane %v1116_v42, 4 }
 0xa7e   :  { %1051 = vmatmul.msk.f32.vlgmr.msra.gmra.mxu2 %vm128_vm2, %v779_v43  ;;  %1052 = vmatmul.msk.f32.vlgmr.msrb.gmra.mxu3 %vm128_vm2, %v779_v43 }
 0xb01   :  { %v799_v20 = vpop.f32.mrf.mxu2  ;;  %v819_v57 = vpop.f32.mrf.mxu3 }
 0xb02   :  { %v800_v44 = vadd.f32 %v799_v20, %v1298_v28  ;;  %v820_v0 = vadd.f32 %v819_v57, %v1301_v31 }
 0xb04   :  { %1117 = vtanh.f32 %v800_v44  ;;  %827 = vrot.lane.b32.xlu2 %v820_v0, %s1162_s22  ;;  %v825_v1 = vmul.f32 %v823_v46, %v820_v0 }
 0xb0a   :  { %v1118_v45 = vpop.eup %1117 }
 0xb0b   :  { %853 = vrot.lane.b32.xlu0 %v1118_v45, %s1162_s22 }
 0xb5e   :  { %v828_v2 = vpop.permute.xlu2 %827 }
 0xb5f   :  { %v830_v5 = vadd.f32 %v828_v2, %v825_v1 }
 0xb61   :  { %v1053_v6 = vmul.f32 -1.442695, %v830_v5 }
 0xb63   :  { %1119 = vpow2.f32 %v1053_v6 }
 0xb69   :  { %v1120_v7 = vpop.eup %1119 }
 0xb6a   :  { %v834_v9 = vadd.f32 1.0, %v1120_v7 }
 0xb6c   :  { %1121 = vrcp.f32 %v834_v9  ;;  %v846_v49 = vand.u32 2147483648, %v834_v9  ;;  %v844_v51 = vand.u32 2147483647, %v834_v9  ;;  %vm840_vm6 = vweird.f32 %v834_v9 }
 0xb6e   :  { %v847_v15 = vor.u32 1.1754944e-38, %v846_v49  ;;  %vm845_vm10 = vcmp.eq.f32.partialorder %v844_v51, 8.507059e+37 }
 0xb72   :  { %v1122_v23 = vpop.eup %1121 }
 0xb73   :  { %v836_v47 = vmul.f32 %v1122_v23, %v834_v9  ;;  %vm841_vm5 = vweird.f32 %v1122_v23 }
 0xb74   :  { %vm842_vm9 = vmor %vm840_vm6, %vm841_vm5 }
 0xb75   :  { %v837_v48 = vsub.f32 1.0, %v836_v47 }
 0xb77   :  { %v838_v50 = vmul.f32 %v1122_v23, %v837_v48 }
 0xb79   :  { %v839_v52 = vadd.f32 %v1122_v23, %v838_v50 }
 0xb7b   :  { %v843_v11 = vsel %vm842_vm9, %v1122_v23, %v839_v52 }
 0xb7c   :  { %v848_v12 = vsel %vm845_vm10, %v847_v15, %v843_v11 }
 0xb7d   :  { %v850_v16 = vsub.f32 1.0, %v848_v12  ;;  %v854_v13 = vpop.permute.xlu0 %853 }
 0xb7e   :  { %v856_v17 = vmul.f32 %v854_v13, %v848_v12 }
 0xb7f   :  { %v851_v18 = vmul.f32 %v1118_v45, %v850_v16 }
 0xb81   :  { %v857_v53 = vadd.f32 %v856_v17, %v851_v18 }
 0xb83   :  { %v974_v54 = vrot.slane %v857_v53, 4  ;;  %1054 = vmatmul.msk.f32.vlgmr.msra.gmra.mxu0 %vm97_vm7, %v857_v53 }
 0xb85   :  { %v985_v56 = vsel %vm70_vm0, %v984_v55, %v974_v54 }
 0xc00   :  { %v878_v59 = vpop.f32.mrf.mxu0 }
 0xc01   :  { %v882_v60 = vrot.slane %v878_v59, 2 }
 0xc03   :  { %v884_v35 = vadd.f32 %v882_v60, %v1412_v22  ;;  %v931_v22 = vrot.slane %v1429_v32, 6 }
 0xc05   :  { %1123 = vtanh.f32 %v884_v35 }
 0xc0b   :  { %v1124_v61 = vpop.eup %1123 }
 0xc0c   :  { %v887_v62 = vrot.slane %v1124_v61, 6 }
 0xc0e   :  { %1055 = vmatmul.msk.f32.vlgmr.msrb.gmra.mxu2 %vm128_vm2, %v887_v62  ;;  %1056 = vmatmul.msk.f32.vlgmr.msra.gmra.mxu3 %vm128_vm2, %v887_v62 }
 0xc91   :  { %v907_v63 = vpop.f32.mrf.mxu2  ;;  %v927_v3 = vpop.f32.mrf.mxu3 }
 0xc92   :  { %v908_v4 = vadd.f32 %v907_v63, %v1298_v28  ;;  %v928_v10 = vadd.f32 %v927_v3, %v1301_v31 }
 0xc94   :  { %1125 = vtanh.f32 %v908_v4  ;;  %935 = vrot.lane.b32.xlu1 %v928_v10, %s1162_s22  ;;  %v933_v19 = vmul.f32 %v931_v22, %v928_v10 }
 0xc9a   :  { %v1126_v8 = vpop.eup %1125 }
 0xc9b   :  { %961 = vrot.lane.b32.xlu2 %v1126_v8, %s1162_s22 }
 0xcf5   :  { %v962_v40 = vpop.permute.xlu2 %961 }
 0xd06   :  { %v936_v24 = vpop.permute.xlu1 %935 }
 0xd07   :  { %v938_v25 = vadd.f32 %v936_v24, %v933_v19 }
 0xd09   :  { %v1057_v26 = vmul.f32 -1.442695, %v938_v25 }
 0xd0b   :  { %1127 = vpow2.f32 %v1057_v26 }
 0xd11   :  { %v1128_v21 = vpop.eup %1127 }
 0xd12   :  { %v942_v58 = vadd.f32 1.0, %v1128_v21 }
 0xd14   :  { %1129 = vrcp.f32 %v942_v58  ;;  %v954_v31 = vand.u32 2147483648, %v942_v58  ;;  %v952_v33 = vand.u32 2147483647, %v942_v58  ;;  %vm948_vm2 = vweird.f32 %v942_v58 }
 0xd16   :  { %v955_v36 = vor.u32 1.1754944e-38, %v954_v31  ;;  %vm953_vm11 = vcmp.eq.f32.partialorder %v952_v33, 8.507059e+37 }
 0xd1a   :  { %v1130_v27 = vpop.eup %1129 }
 0xd1b   :  { %v944_v28 = vmul.f32 %v1130_v27, %v942_v58  ;;  %vm949_vm0 = vweird.f32 %v1130_v27 }
 0xd1c   :  { %vm950_vm1 = vmor %vm948_vm2, %vm949_vm0 }
 0xd1d   :  { %v945_v29 = vsub.f32 1.0, %v944_v28 }
 0xd1f   :  { %v946_v30 = vmul.f32 %v1130_v27, %v945_v29 }
 0xd21   :  { %v947_v34 = vadd.f32 %v1130_v27, %v946_v30 }
 0xd23   :  { %v951_v32 = vsel %vm950_vm1, %v1130_v27, %v947_v34 }
 0xd24   :  { %v956_v37 = vsel %vm953_vm11, %v955_v36, %v951_v32 }
 0xd25   :  { %v958_v38 = vsub.f32 1.0, %v956_v37  ;;  %v964_v42 = vmul.f32 %v962_v40, %v956_v37 }
 0xd27   :  { %v959_v41 = vmul.f32 %v1126_v8, %v958_v38 }
 0xd29   :  { %v965_v43 = vadd.f32 %v964_v42, %v959_v41 }
 0xd2b   :  { %v977_v20 = vrot.slane %v965_v43, 2 }
 0xd2d   :  { %v986_v57 = vsel %vm982_vm8, %v985_v56, %v977_v20 }
 0xd2e   :  { %1059 = vmatmul.msk.f32.gmra.mxu1 %vm97_vm7, %v986_v57 }
 0xdab   :  { %v1013_v44 = vpop.f32.mrf.mxu1 }
 0xdac   :  { %v1014_v0 = vadd.f32 %v1013_v44, %v1456_v39 }
 0xdae   :  { %1018 = vst.msk [vmem:[%s1492_s3 + $0x8] sm:$0xff] %vm1016_vm4, %v1014_v0 }
 0xdaf   :  { %1023 = vsyncpa [#allocation3], 1 }

</bundles_post_ra>
